<compile_context>
chip_gen: v7x
topology: tpu7x:2x2x1
jax: 0.10.0
libtpu: 0.0.40
codegen_flags: <defaults>
</compile_context>

<pallas_src>
import functools
import math

import jax
import jax.numpy as jnp
from jax.experimental import pallas as pl
from jax.experimental.pallas import tpu as pltpu


def _round_up(x, m):
    return (x + m - 1) // m * m


def _tpu_hw():
    """Return (vmem_capacity_bytes, is_v7x); conservative fallbacks if undetectable."""
    is_v7 = False
    kind_known = False
    try:
        kind = jax.devices()[0].device_kind.lower()
        kind_known = True
        is_v7 = "v7" in kind
    except Exception:
        pass
    try:
        cap = int(pltpu.get_tpu_info().vmem_capacity_bytes)
    except Exception:
        if kind_known and not is_v7:
            cap = 128 << 20          # v4/v5e/v6e: 128 MiB VMEM per TensorCore
        else:
            cap = 64 << 20           # v7x (or unknown): assume the smaller VMEM
    return cap, is_v7


def _splc_hill_kernel(logits_ref, targets_ref, tau_ref, loss_ref, tau_out_ref, *,
                      margin, gamma, lamb, alpha, apply_splc):
    # Blocks: logits/targets (B, T); tau / outputs (1, T). Classes live on lanes.
    x = logits_ref[...].astype(jnp.float32)           # (B, T)
    t = targets_ref[...].astype(jnp.float32)          # (B, T), binary {0, 1}
    tb = t > 0.5                                      # positives mask

    # SPLC margin shift on positives (== torch.where(targets == 1, x - margin, x)).
    xm = jnp.where(tb, x - margin, x)

    # One shared exp feeds both sigmoids:  e0 = exp(-xm),  e1 = e0*exp(margin).
    e0 = jnp.exp(-xm)                                 # single EUP transcendental
    # pred feeds the SPLC threshold compare below -> keep the exact f32 divide so the
    # label-flip decision matches the reference bit-for-bit near the boundary.
    pred = 1.0 / (1.0 + e0)                           # sigmoid(xm) == Hill pred_neg

    # tau_per_class EMA update (the torch.no_grad() block): two sublane reductions.
    sum_t = jnp.sum(t, axis=0, keepdims=True)                          # (1, T)
    sum_pt = jnp.sum(jnp.where(tb, pred, 0.0), axis=0, keepdims=True)  # (pred*t).sum(0)
    tau_new = tau_ref[...] * (1.0 - alpha * sum_t) + alpha * sum_pt
    tau_out_ref[...] = tau_new

    # Self-paced label correction (epoch >= change_epoch), with the *updated* tau.
    if apply_splc:
        conf = jnp.where(tb, pred, 1.0 - pred)        # t*pred + (1-t)*(1-pred)
        # keep label where conf > tau, else flip  ==  XOR with the flip mask.
        tb = jnp.logical_xor(tb, conf <= tau_new)

    # Hill loss on (xm, corrected binary targets). pred_pos only feeds smooth terms,
    # so the cheap EUP approx reciprocal is fine; log(pred_pos) = -log(1 + e1).
    e1 = e0 * jnp.float32(math.exp(margin))           # exp(-(xm - margin)), const scale
    pred_pos = pl.reciprocal(1.0 + e1, approx=True)   # sigmoid(xm - margin)
    log_pred_pos = -jnp.log(1.0 + e1)                 # no 0*(-inf) NaN hazard

    pt_w = jnp.where(tb, 1.0 - pred_pos, 1.0)         # (1-pred_pos)*t + (1-t)
    g = float(gamma)
    gi = int(round(g))
    if abs(g - gi) < 1e-12 and 1 <= gi <= 8:
        focal = pt_w                                  # integer gamma: VALU multiplies
        for _ in range(gi - 1):
            focal = focal * pt_w
    elif g == 0.0:
        focal = jnp.ones_like(pt_w)
    else:
        focal = pt_w ** g                             # non-integer gamma: pow (EUP exp+log)

    # t*log(pred_pos) + (1-t)*-(lamb - pred)*pred^2 as a select on the binary mask.
    core = jnp.where(tb, log_pred_pos, (pred - lamb) * (pred * pred))
    # Per-class partial sums (lane-dense output); scalar reduce happens in the wrapper.
    loss_ref[...] = -jnp.sum(core * focal, axis=0, keepdims=True)


def splc_modified_forward(logits, targets, epoch, tau_per_class=None, *,
                          tau=0.6, change_epoch=1, margin=1.0, gamma=2.0,
                          lamb=1.5, alpha=1e-4, reduction="sum", training=True,
                          vmem_budget_bytes=None):
    """One SPLCModified.forward(). Returns (loss, updated tau_per_class)."""
    B, C = logits.shape
    if tau_per_class is None:
        # lazy init in torch: torch.ones(C) * tau
        tau_per_class = jnp.full((C,), tau, dtype=jnp.float32)

    # NOTE: epoch/change_epoch must be concrete Python values (static branch);
    # crossing change_epoch triggers exactly one recompile.
    apply_splc = bool(epoch >= change_epoch)

    # binary labels streamed at 1 B/elem (no-op if already int8/bool-packed upstream)
    targets_i8 = targets if targets.dtype == jnp.int8 else targets.astype(jnp.int8)
    tau2d = tau_per_class.astype(jnp.float32).reshape(1, C)

    # ---- class-tile selection: biggest lane tile within the per-chip VMEM budget ----
    vmem_cap, is_v7 = _tpu_hw()
    if vmem_budget_bytes is None:
        # ~48 MiB on v7x (64 MiB physical), 96 MiB on v5e/v6e (128 MiB physical)
        vmem_budget_bytes = min(96 << 20, (vmem_cap * 3) // 4)
    itemsize = jnp.dtype(logits.dtype).itemsize
    # Per lane-column: 2x double-buffered streamed inputs (logits + int8 targets)
    # plus ~6 live f32 (B, tile) temporaries in the kernel body.
    per_col_bytes = B * (2 * (itemsize + 1) + 6 * 4)
    tile_cap = max(128, (vmem_budget_bytes // per_col_bytes) // 128 * 128)
    tile_cap = min(tile_cap, 2048)           # >2048 lanes stops paying

    c128 = _round_up(C, 128)
    n_steps = max(1, pl.cdiv(c128, tile_cap))
    if is_v7 and C >= 256:
        # v7x megacore: make sure the "parallel" class axis has >=2 balanced steps.
        n_steps = max(2, n_steps)
        n_steps += n_steps % 2
    if n_steps == 1:
        class_tile = C                       # single full-width block; legal for any C
    else:
        class_tile = _round_up(pl.cdiv(c128, n_steps), 128)
    # Ragged last block: OOB reads land in dead lanes (per-lane compute only),
    # OOB writes are masked by Pallas, so no jnp.pad copies of the inputs are needed.
    n_steps = pl.cdiv(C, class_tile)
    # TODO(synk): very large B (a single 128-lane column set overflowing VMEM) needs a
    # two-phase batch-tiled accumulator grid (tau pass, then loss pass); not implemented.

    kernel = functools.partial(
        _splc_hill_kernel, margin=float(margin), gamma=float(gamma), lamb=float(lamb),
        alpha=float(alpha) if training else 0.0,   # torch: alpha only if requires_grad
        apply_splc=apply_splc)

    cost = pl.CostEstimate(
        flops=int(28 * B * C),
        transcendentals=int(2 * B * C),            # shared exp + one log per element
        bytes_accessed=int(B * C * (itemsize + 1) + 3 * C * 4))

    vmem_limit = int(min(vmem_cap - (8 << 20), vmem_budget_bytes + (16 << 20)))
    vmem_limit = max(vmem_limit, 16 << 20)

    loss_pc, tau_new = pl.pallas_call(
        kernel,
        out_shape=(jax.ShapeDtypeStruct((1, C), jnp.float32),   # per-class loss sums
                   jax.ShapeDtypeStruct((1, C), jnp.float32)),  # updated tau_per_class
        grid_spec=pltpu.PrefetchScalarGridSpec(
            num_scalar_prefetch=0,
            grid=(n_steps,),
            in_specs=[
                pl.BlockSpec((B, class_tile), lambda j: (0, j)),
                pl.BlockSpec((B, class_tile), lambda j: (0, j)),
                pl.BlockSpec((1, class_tile), lambda j: (0, j)),
            ],
            out_specs=[
                pl.BlockSpec((1, class_tile), lambda j: (0, j)),
                pl.BlockSpec((1, class_tile), lambda j: (0, j)),
            ],
        ),
        compiler_params=pltpu.CompilerParams(
            dimension_semantics=("parallel",),
            vmem_limit_bytes=vmem_limit),
        cost_estimate=cost,
    )(logits, targets_i8, tau2d)

    loss_sum = jnp.sum(loss_pc[0])
    if reduction == "sum":
        loss = loss_sum
    elif reduction == "mean":
        loss = loss_sum / (B * C)
    else:
        # TODO(synk): reduction='none' needs the full (B, C) elementwise loss as an
        # extra kernel output; only 'sum' (module default) and 'mean' are implemented.
        raise NotImplementedError("reduction must be 'sum' or 'mean'")
    return loss, tau_new[0]


# ---------------- pure-JAX reference (mirrors the torch code) ----------------
def _reference_forward(logits, targets, epoch, tau_per_class, *, change_epoch=1,
                       margin=1.0, gamma=2.0, lamb=1.5, alpha=1e-4, training=True):
    x = logits.astype(jnp.float32)
    t = targets.astype(jnp.float32)
    xm = jnp.where(t == 1.0, x - margin, x)
    pred = 1.0 / (1.0 + jnp.exp(-xm))
    a = alpha if training else 0.0
    tau_new = tau_per_class.astype(jnp.float32) * (1.0 - a * t.sum(0)) + a * (pred * t).sum(0)
    if epoch >= change_epoch:
        t = jnp.where(t * pred + (1.0 - t) * (1.0 - pred) > tau_new[None, :], t, 1.0 - t)
    # Hill(logits=xm, targets=t), reduction='sum'
    pred_pos = 1.0 / (1.0 + jnp.exp(-(xm - margin)))
    pred_neg = pred
    pt = (1.0 - pred_pos) * t + (1.0 - t)
    focal = pt ** gamma
    los_pos = t * jnp.log(pred_pos)
    los_neg = (1.0 - t) * -(lamb - pred_neg) * pred_neg ** 2
    loss = -(los_pos + los_neg) * focal
    return loss.sum(), tau_new


if __name__ == "__main__":
    # Small (N, C) multi-label problem; C=320 exercises the ragged (non-128-multiple)
    # class dimension; the tiny explicit VMEM budget exercises the multi-tile grid.
    batch, num_classes = 8, 320
    key = jax.random.PRNGKey(0)
    k1, k2 = jax.random.split(key)
    logits = 2.0 * jax.random.normal(k1, (batch, num_classes), dtype=jnp.float32)
    targets = (jax.random.uniform(k2, (batch, num_classes)) > 0.7).astype(jnp.int8)

    # Lazy state init from the module: tau_per_class = tau * ones(C), kept in f32.
    tau0 = jnp.full((num_classes,), 0.6, dtype=jnp.float32)

    for epoch in (0, 1):          # epoch 0: no label correction; epoch 1: flip path
        for budget in (None, 1):  # None: auto per-chip tile; 1: forces 128-lane tiles
            loss, tau_new = splc_modified_forward(
                logits, targets, epoch, tau0, tau=0.6, change_epoch=1, margin=1.0,
                gamma=2.0, lamb=1.5, alpha=1e-4, reduction="sum", training=True,
                vmem_budget_bytes=budget)
            loss, tau_new = jax.block_until_ready((loss, tau_new))

            ref_loss, ref_tau = _reference_forward(
                logits, targets, epoch, tau0, change_epoch=1, margin=1.0,
                gamma=2.0, lamb=1.5, alpha=1e-4, training=True)
            # Loss tolerance relaxed slightly for the approx-reciprocal pred_pos path
            # (rel err ~1e-4 on smooth terms only); tau uses the exact divide.
            assert jnp.allclose(loss, ref_loss, rtol=1e-3, atol=1e-3), (
                epoch, budget, float(loss), float(ref_loss))
            assert jnp.allclose(tau_new, ref_tau, rtol=1e-5, atol=1e-6), (
                epoch, budget, float(jnp.max(jnp.abs(tau_new - ref_tau))))

    print("KERNEL_OK")
</pallas_src>

<mosaic_0001>
module attributes {stable_mosaic.version = 11 : i64} {
  func.func @_splc_hill_kernel(%arg0: i32, %arg1: memref<8x320xf32, #tpu.memory_space<vmem>>, %arg2: memref<8x320xi8, #tpu.memory_space<vmem>>, %arg3: memref<1x320xf32, #tpu.memory_space<vmem>>, %arg4: memref<1x320xf32, #tpu.memory_space<vmem>>, %arg5: memref<1x320xf32, #tpu.memory_space<vmem>>) attributes {dimension_semantics = [#tpu.dimension_semantics<parallel>], iteration_bounds = array<i64: 1>, scalar_prefetch = 0 : i64, scratch_operands = 0 : i64, tpu.core_type = #tpu.core_type<tc>, window_params = [{transform_indices = @transform_0, window_bounds = array<i64: 8, 320>}, {transform_indices = @transform_1, window_bounds = array<i64: 8, 320>}, {transform_indices = @transform_2, window_bounds = array<i64: 1, 320>}, {transform_indices = @transform_3, window_bounds = array<i64: 1, 320>}, {transform_indices = @transform_4, window_bounds = array<i64: 1, 320>}]} {
    %c0 = arith.constant 0 : index
    %c0_0 = arith.constant 0 : index
    %0 = vector.load %arg1[%c0, %c0_0] : memref<8x320xf32, #tpu.memory_space<vmem>>, vector<8x320xf32>
    %c0_1 = arith.constant 0 : index
    %c0_2 = arith.constant 0 : index
    %1 = vector.load %arg2[%c0_1, %c0_2] : memref<8x320xi8, #tpu.memory_space<vmem>>, vector<8x320xi8>
    %2 = arith.sitofp %1 : vector<8x320xi8> to vector<8x320xf32>
    %cst = arith.constant 5.000000e-01 : f32
    %3 = vector.broadcast %cst : f32 to vector<8x320xf32>
    %4 = arith.cmpf ogt, %2, %3 : vector<8x320xf32>
    %cst_3 = arith.constant 1.000000e+00 : f32
    %5 = vector.broadcast %cst_3 : f32 to vector<8x320xf32>
    %6 = arith.subf %0, %5 : vector<8x320xf32>
    %7 = arith.select %4, %6, %0 : vector<8x320xi1>, vector<8x320xf32>
    %cst_4 = arith.constant 0.000000e+00 : f32
    %8 = vector.broadcast %cst_4 : f32 to vector<8x320xf32>
    %9 = arith.subf %8, %7 : vector<8x320xf32>
    %10 = math.exp %9 : vector<8x320xf32>
    %cst_5 = arith.constant 1.000000e+00 : f32
    %11 = vector.broadcast %cst_5 : f32 to vector<8x320xf32>
    %12 = arith.addf %11, %10 : vector<8x320xf32>
    %cst_6 = arith.constant 1.000000e+00 : f32
    %13 = vector.broadcast %cst_6 : f32 to vector<8x320xf32>
    %14 = arith.divf %13, %12 : vector<8x320xf32>
    %cst_7 = arith.constant dense<0.000000e+00> : vector<320xf32>
    %15 = vector.multi_reduction <add>, %2, %cst_7 [0] : vector<8x320xf32> to vector<320xf32>
    %16 = vector.shape_cast %15 : vector<320xf32> to vector<1x320xf32>
    %cst_8 = arith.constant 0.000000e+00 : f32
    %17 = vector.broadcast %cst_8 : f32 to vector<8x320xf32>
    %18 = arith.select %4, %14, %17 : vector<8x320xi1>, vector<8x320xf32>
    %cst_9 = arith.constant dense<0.000000e+00> : vector<320xf32>
    %19 = vector.multi_reduction <add>, %18, %cst_9 [0] : vector<8x320xf32> to vector<320xf32>
    %20 = vector.shape_cast %19 : vector<320xf32> to vector<1x320xf32>
    %c0_10 = arith.constant 0 : index
    %c0_11 = arith.constant 0 : index
    %21 = vector.load %arg3[%c0_10, %c0_11] : memref<1x320xf32, #tpu.memory_space<vmem>>, vector<1x320xf32>
    %cst_12 = arith.constant 9.99999974E-5 : f32
    %22 = vector.broadcast %cst_12 : f32 to vector<1x320xf32>
    %23 = arith.mulf %22, %16 : vector<1x320xf32>
    %cst_13 = arith.constant 1.000000e+00 : f32
    %24 = vector.broadcast %cst_13 : f32 to vector<1x320xf32>
    %25 = arith.subf %24, %23 : vector<1x320xf32>
    %26 = arith.mulf %21, %25 : vector<1x320xf32>
    %cst_14 = arith.constant 9.99999974E-5 : f32
    %27 = vector.broadcast %cst_14 : f32 to vector<1x320xf32>
    %28 = arith.mulf %27, %20 : vector<1x320xf32>
    %29 = arith.addf %26, %28 : vector<1x320xf32>
    %c0_15 = arith.constant 0 : index
    %c0_16 = arith.constant 0 : index
    %30 = vector.load %arg5[%c0_15, %c0_16] : memref<1x320xf32, #tpu.memory_space<vmem>>, vector<1x320xf32>
    tpu.vector_store %arg5[%c0_15, %c0_16], %29 {strides = array<i32>} : memref<1x320xf32, #tpu.memory_space<vmem>>, vector<1x320xf32>,
    %cst_17 = arith.constant 2.71828175 : f32
    %31 = vector.broadcast %cst_17 : f32 to vector<8x320xf32>
    %32 = arith.mulf %10, %31 : vector<8x320xf32>
    %cst_18 = arith.constant 1.000000e+00 : f32
    %33 = vector.broadcast %cst_18 : f32 to vector<8x320xf32>
    %34 = arith.addf %33, %32 : vector<8x320xf32>
    %35 = tpu.reciprocal %34 {approx = true} : vector<8x320xf32> -> vector<8x320xf32>
    %cst_19 = arith.constant 1.000000e+00 : f32
    %36 = vector.broadcast %cst_19 : f32 to vector<8x320xf32>
    %37 = arith.addf %36, %32 : vector<8x320xf32>
    %38 = math.log %37 : vector<8x320xf32>
    %cst_20 = arith.constant 0.000000e+00 : f32
    %39 = vector.broadcast %cst_20 : f32 to vector<8x320xf32>
    %40 = arith.subf %39, %38 : vector<8x320xf32>
    %cst_21 = arith.constant 1.000000e+00 : f32
    %41 = vector.broadcast %cst_21 : f32 to vector<8x320xf32>
    %42 = arith.subf %41, %35 : vector<8x320xf32>
    %cst_22 = arith.constant 1.000000e+00 : f32
    %43 = vector.broadcast %cst_22 : f32 to vector<8x320xf32>
    %44 = arith.select %4, %42, %43 : vector<8x320xi1>, vector<8x320xf32>
    %45 = arith.mulf %44, %44 : vector<8x320xf32>
    %cst_23 = arith.constant 1.500000e+00 : f32
    %46 = vector.broadcast %cst_23 : f32 to vector<8x320xf32>
    %47 = arith.subf %14, %46 : vector<8x320xf32>
    %48 = arith.mulf %14, %14 : vector<8x320xf32>
    %49 = arith.mulf %47, %48 : vector<8x320xf32>
    %50 = arith.select %4, %40, %49 : vector<8x320xi1>, vector<8x320xf32>
    %51 = arith.mulf %50, %45 : vector<8x320xf32>
    %cst_24 = arith.constant dense<0.000000e+00> : vector<320xf32>
    %52 = vector.multi_reduction <add>, %51, %cst_24 [0] : vector<8x320xf32> to vector<320xf32>
    %53 = vector.shape_cast %52 : vector<320xf32> to vector<1x320xf32>
    %cst_25 = arith.constant 0.000000e+00 : f32
    %54 = vector.broadcast %cst_25 : f32 to vector<1x320xf32>
    %55 = arith.subf %54, %53 : vector<1x320xf32>
    %c0_26 = arith.constant 0 : index
    %c0_27 = arith.constant 0 : index
    %56 = vector.load %arg4[%c0_26, %c0_27] : memref<1x320xf32, #tpu.memory_space<vmem>>, vector<1x320xf32>
    tpu.vector_store %arg4[%c0_26, %c0_27], %55 {strides = array<i32>} : memref<1x320xf32, #tpu.memory_space<vmem>>, vector<1x320xf32>,
    return
  }
  func.func @transform_0(%arg0: i32) -> (i32, i32) {
    %c0_i32 = arith.constant 0 : i32
    %c0_i32_0 = arith.constant 0 : i32
    return %c0_i32, %arg0 : i32, i32
  }
  func.func @transform_1(%arg0: i32) -> (i32, i32) {
    %c0_i32 = arith.constant 0 : i32
    %c0_i32_0 = arith.constant 0 : i32
    return %c0_i32, %arg0 : i32, i32
  }
  func.func @transform_2(%arg0: i32) -> (i32, i32) {
    %c0_i32 = arith.constant 0 : i32
    %c0_i32_0 = arith.constant 0 : i32
    return %c0_i32, %arg0 : i32, i32
  }
  func.func @transform_3(%arg0: i32) -> (i32, i32) {
    %c0_i32 = arith.constant 0 : i32
    %c0_i32_0 = arith.constant 0 : i32
    return %c0_i32, %arg0 : i32, i32
  }
  func.func @transform_4(%arg0: i32) -> (i32, i32) {
    %c0_i32 = arith.constant 0 : i32
    %c0_i32_0 = arith.constant 0 : i32
    return %c0_i32, %arg0 : i32, i32
  }
}

</mosaic_0001>

<bundles_post_ra>
// kernel: tpu_custom_call.1
= control target key start
LH: loop header
LB: loop body
LE: loop exit
PB: predicated region body
PF: predicated region fallthrough
CT: control target
= control target key end

     0   :  { %10 = vsyncpa [#allocation3], 0  ;;  %s632_s0 = inlined_call_operand.hbm [shape: f32[8,320], index: 0, kind: input, shape index: {}]   ;;  %s633_s1 = inlined_call_operand.hbm [shape: s8[8,320], index: 1, kind: input, shape index: {}]   ;;  %s634_s2 = inlined_call_operand.hbm [shape: f32[1,320], index: 2, kind: input, shape index: {}]   ;;  %s635_s3 = inlined_call_operand.hbm [shape: f32[1,320], index: 3, kind: output, shape index: {0}]   ;;  %s636_s4 = inlined_call_operand.hbm [shape: f32[1,320], index: 4, kind: output, shape index: {1}]  }
   0x1   :  { %11 = vsyncpa [#allocation6], 0 }
   0x2   :  { %12 = vsyncpa [#allocation4], 0 }
   0x3   :  { %13 = vsyncpa [#allocation10], 0  ;;  %s479_s15 = smov [#allocation5]   ;;  %s480_s17 = smov [#allocation2]  }
   0x4   :  { %s30_s16 = sshll.u32 %s479_s15, 4  ;;  %s20_s18 = sshll.u32 %s480_s17, 4  ;;  %s31_s16 = int_to_ptr.vmem [resolvable:$true] %s30_s16  ;;  %s21_s18 = int_to_ptr.vmem [resolvable:$true] %s20_s18 }
   0x5   :  { %s361_s21 = scalar_lea.hbm %s633_s1, 96 }
   0x6   :  { %p362_p0 = scmp.ne.s32.totalorder %s633_s1, %s361_s21  ;;  %p365_p1 = scmp.lt.u32.totalorder %s361_s21, %s633_s1 }
   0x8   :  { %p367_p2 = pnand %p365_p1, %p362_p0 }
   0xa   :  { %370 = shalt.err (!%p367_p2)
}
   0xb   :  { %s371_s26 = scalar_lea.vmem %s31_s16, 96  ;;  %p376_p4 = scmp.lt.s32.totalorder %s31_s16, %s31_s16 }
   0xc   :  { %p372_p3 = scmp.ne.s32.totalorder %s31_s16, %s371_s26  ;;  %p377_p5 = scmp.lt.s32.totalorder %s371_s26, %s371_s26 }
   0xe   :  { %p378_p6 = por %p377_p5, %p376_p4 }
  0x10   :  { %p379_p7 = pnand %p378_p6, %p372_p3 }
  0x12   :  { %382 = shalt.err (!%p379_p7)
}
  0x13   :  { %33 = dma.hbm_to_vmem [thread:$0]  %s633_s1, 96, %s31_s16, [#allocation6]  }
  0x14   :  { %s383_s5 = scalar_lea.hbm %s632_s0, 384 }
  0x15   :  { %p384_p8 = scmp.ne.s32.totalorder %s632_s0, %s383_s5  ;;  %p387_p9 = scmp.lt.u32.totalorder %s383_s5, %s632_s0 }
  0x17   :  { %p389_p10 = pnand %p387_p9, %p384_p8 }
  0x19   :  { %392 = shalt.err (!%p389_p10)
}
  0x1a   :  { %s393_s10 = scalar_lea.vmem %s21_s18, 384  ;;  %p398_p12 = scmp.lt.s32.totalorder %s21_s18, %s21_s18 }
  0x1b   :  { %p394_p11 = scmp.ne.s32.totalorder %s21_s18, %s393_s10  ;;  %p399_p13 = scmp.lt.s32.totalorder %s393_s10, %s393_s10 }
  0x1d   :  { %p400_p0 = por %p399_p13, %p398_p12 }
  0x1f   :  { %p401_p1 = pnand %p400_p0, %p394_p11 }
  0x21   :  { %404 = shalt.err (!%p401_p1)
}
  0x22   :  { %23 = dma.hbm_to_vmem [thread:$0]  %s632_s0, 384, %s21_s18, [#allocation3]  }
  0x23   :  { %s481_s12 = smov [#allocation7]   ;;  %s405_s16 = scalar_lea.hbm %s634_s2, 48 }
  0x24   :  { %s40_s13 = sshll.u32 %s481_s12, 4  ;;  %p406_p2 = scmp.ne.s32.totalorder %s634_s2, %s405_s16  ;;  %s41_s13 = int_to_ptr.vmem [resolvable:$true] %s40_s13 }
  0x25   :  { %p409_p3 = scmp.lt.u32.totalorder %s405_s16, %s634_s2 }
  0x27   :  { %p411_p4 = pnand %p409_p3, %p406_p2 }
  0x29   :  { %414 = shalt.err (!%p411_p4)
}
  0x2a   :  { %s415_s22 = scalar_lea.vmem %s41_s13, 48  ;;  %s419_s0 = scalar_lea.vmem %s41_s13, 64 }
  0x2b   :  { %p416_p5 = scmp.ne.s32.totalorder %s41_s13, %s415_s22  ;;  %p420_p6 = scmp.lt.s32.totalorder %s41_s13, %s41_s13 }
  0x2c   :  { %p421_p7 = scmp.lt.s32.totalorder %s419_s0, %s415_s22 }
  0x2e   :  { %p422_p8 = por %p421_p7, %p420_p6 }
  0x30   :  { %p423_p9 = pnand %p422_p8, %p416_p5 }
  0x32   :  { %426 = shalt.err (!%p423_p9)
}
  0x33   :  { %43 = dma.hbm_to_vmem [thread:$0]  %s634_s2, 48, %s41_s13, [#allocation6]  }
  0x34   :  { %471 = dma.done.wait [#allocation3], 384  }
  0x35   :  { %472 = vsyncadd [#allocation3], 4294966912 }
  0x36   :  { %473 = dma.done.wait [#allocation6], 144  }
  0x37   :  { %474 = vsyncadd [#allocation6], 4294967152  ;;  %v53_v0 = vld [vmem:[#allocation2] sm:$0xff]  ;;  %v54_v1 = vld [vmem:[#allocation2 + $0x8] sm:$0xff]  ;;  %vm102_vm0 = vcmask 523264   ;;  %v146_v40 = vlaneseq  ;;  %s483_s2 = smov [#allocation9]  }
  0x38   :  { %v55_v2 = vld [vmem:[#allocation2 + $0x10] sm:$0xff]  ;;  %v56_v3 = vld [vmem:[#allocation5] sm:$0x3f]  ;;  %v325_v7 = vadd.f32 -1.0, %v53_v0  ;;  %v326_v8 = vadd.f32 -1.0, %v54_v1  ;;  %s311_s24 = sshll.u32 %s483_s2, 4  ;;  %s312_s24 = int_to_ptr.vmem [resolvable:$true] %s311_s24 }
  0x39   :  { %v57_v4 = vunpack.c.0.s8 %v56_v3  ;;  %v58_v5 = vunpack.c.1.s8 %v56_v3  ;;  %v59_v6 = vunpack.c.2.s8 %v56_v3  ;;  %v327_v9 = vadd.f32 -1.0, %v55_v2  ;;  %s427_s25 = scalar_lea.vmem %s312_s24, 48  ;;  %s431_s26 = scalar_lea.vmem %s312_s24, 64 }
  0x3a   :  { %v482_v46 = vmov 1966171168   ;;  %v147_v54 = vshrl.u32 %v146_v40, 7  ;;  %vm597_vm4 = vcmp.lt.s32.totalorder %v146_v40, 320  ;;  %p428_p10 = scmp.ne.s32.totalorder %s312_s24, %s427_s25  ;;  %p432_p11 = scmp.lt.s32.totalorder %s312_s24, %s312_s24 }
  0x3b   :  { %v546_v10 = vcvt.s32.f32 %v57_v4  ;;  %v548_v11 = vcvt.s32.f32 %v58_v5  ;;  %v550_v12 = vcvt.s32.f32 %v59_v6  ;;  %v144_v47 = vunpack.c.l.s4 %v482_v46  ;;  %p433_p12 = scmp.lt.s32.totalorder %s431_s26, %s427_s25 }
  0x3d   :  { %vm63_vm1 = vcmp.gt.f32.partialorder %v546_v10, 0.5  ;;  %vm64_vm2 = vcmp.gt.f32.partialorder %v548_v11, 0.5  ;;  %vm65_vm3 = vcmp.gt.f32.partialorder %v550_v12, 0.5  ;;  %v90_v13 = vrot.slane %v546_v10, 4  ;;  %p434_p13 = por %p433_p12, %p432_p11 }
  0x3e   :  { %v69_v14 = vsel %vm63_vm1, %v325_v7, %v53_v0  ;;  %v70_v15 = vsel %vm64_vm2, %v326_v8, %v54_v1  ;;  %v71_v16 = vsel %vm65_vm3, %v327_v9, %v55_v2  ;;  %v96_v17 = vrot.slane %v548_v11, 4 }
  0x3f   :  { %v72_v18 = vsub.f32 0.0, %v69_v14  ;;  %v73_v19 = vsub.f32 0.0, %v70_v15  ;;  %v74_v20 = vsub.f32 0.0, %v71_v16  ;;  %v91_v21 = vadd.f32 %v90_v13, %v546_v10  ;;  %p435_p0 = pnand %p434_p13, %p428_p10 }
  0x40   :  { %v97_v22 = vadd.f32 %v96_v17, %v548_v11  ;;  %v103_v23 = vsel %vm102_vm0, %v550_v12, 0.0  ;;  %v145_v60 = vunpack.c.0.s8 %v144_v47 }
  0x41   :  { %v75_v24 = vmul.f32 1.442695, %v72_v18  ;;  %v77_v25 = vmul.f32 1.442695, %v73_v19  ;;  %v79_v26 = vmul.f32 1.442695, %v74_v20 }
  0x42   :  { %v92_v27 = vrot.slane %v91_v21, 2  ;;  %v98_v28 = vrot.slane %v97_v22, 2  ;;  %v104_v29 = vrot.slane %v103_v23, 4  ;;  %v568_v0 = vsub.s32 %v145_v60, %v147_v54 }
  0x43   :  { %337 = vpow2.f32 %v75_v24 }
  0x44   :  { %339 = vpow2.f32 %v77_v25  ;;  %v93_v30 = vadd.f32 %v92_v27, %v91_v21  ;;  %v99_v31 = vadd.f32 %v98_v28, %v97_v22  ;;  %v105_v32 = vadd.f32 %v104_v29, %v103_v23 }
  0x45   :  { %341 = vpow2.f32 %v79_v26 }
  0x46   :  { %v94_v33 = vrot.slane %v93_v30, 1  ;;  %v100_v34 = vrot.slane %v99_v31, 1  ;;  %v106_v35 = vrot.slane %v105_v32, 2 }
  0x48   :  { %v107_v36 = vadd.f32 %v106_v35, %v105_v32  ;;  %v95_v37 = vadd.f32 %v94_v33, %v93_v30  ;;  %v101_v38 = vadd.f32 %v100_v34, %v99_v31 }
  0x4a   :  { %v108_v39 = vrot.slane %v107_v36, 1  ;;  %v133_v42 = vmul.f32 0.0001, %v95_v37  ;;  %v134_v45 = vmul.f32 0.0001, %v101_v38 }
  0x4c   :  { %v109_v51 = vadd.f32 %v108_v39, %v107_v36  ;;  %v136_v58 = vsub.f32 1.0, %v133_v42  ;;  %v137_v59 = vsub.f32 1.0, %v134_v45 }
  0x4d   :  { %v338_v41 = vpop.eup %337 }
  0x4e   :  { %v340_v43 = vpop.eup %339  ;;  %v81_v44 = vadd.f32 1.0, %v338_v41  ;;  %v203_v48 = vmul.f32 2.7182817, %v338_v41  ;;  %v135_v61 = vmul.f32 0.0001, %v109_v51  ;;  %v142_v63 = vcombine.low %v136_v58, %v137_v59 }
  0x4f   :  { %v342_v49 = vpop.eup %341  ;;  %v82_v50 = vadd.f32 1.0, %v340_v43  ;;  %v204_v52 = vmul.f32 2.7182817, %v340_v43 }
  0x50   :  { %v83_v53 = vadd.f32 1.0, %v342_v49  ;;  %343 = vrcp.f32 %v81_v44  ;;  %v205_v55 = vmul.f32 2.7182817, %v342_v49  ;;  %v206_v56 = vadd.f32 1.0, %v203_v48 }
  0x51   :  { %345 = vrcp.f32 %v82_v50  ;;  %v207_v57 = vadd.f32 1.0, %v204_v52  ;;  %v138_v1 = vsub.f32 1.0, %v135_v61  ;;  %v149_v3 = vrot.slane %v142_v63, %v568_v0 }
  0x52   :  { %347 = vrcp.f32 %v83_v53  ;;  %v208_v62 = vadd.f32 1.0, %v205_v55 }
  0x53   :  { %349 = vrcp.f32 %v206_v56  ;;  %v156_v6 = vrot.slane %v138_v1, %v568_v0 }
  0x54   :  { %351 = vrcp.f32 %v207_v57 }
  0x55   :  { %353 = vrcp.f32 %v208_v62  ;;  %v157_v61 = vcombine.low %v149_v3, %v156_v6 }
  0x56   :  { %355 = vlog2.f32 %v206_v56 }
  0x57   :  { %357 = vlog2.f32 %v207_v57  ;;  %v164_v10 = vrot.slane %v157_v61, %v568_v0 }
  0x58   :  { %359 = vlog2.f32 %v208_v62 }
  0x5a   :  { %v344_v2 = vpop.eup %343 }
  0x5b   :  { %v346_v4 = vpop.eup %345  ;;  %v110_v5 = vsel %vm63_vm1, %v344_v2, 0.0  ;;  %v328_v7 = vadd.f32 -1.5, %v344_v2  ;;  %v233_v8 = vmul.f32 %v344_v2, %v344_v2 }
  0x5c   :  { %v348_v9 = vpop.eup %347  ;;  %v111_v13 = vsel %vm64_vm2, %v346_v4, 0.0  ;;  %v113_v14 = vrot.slane %v110_v5, 4  ;;  %v329_v15 = vadd.f32 -1.5, %v346_v4  ;;  %v234_v16 = vmul.f32 %v346_v4, %v346_v4 }
  0x5d   :  { %v350_v17 = vpop.eup %349  ;;  %v112_v18 = vsel %vm65_vm3, %v348_v9, 0.0  ;;  %v119_v19 = vrot.slane %v111_v13, 4  ;;  %v330_v20 = vadd.f32 -1.5, %v348_v9  ;;  %v235_v21 = vmul.f32 %v348_v9, %v348_v9 }
  0x5e   :  { %v352_v22 = vpop.eup %351  ;;  %v114_v23 = vadd.f32 %v113_v14, %v110_v5  ;;  %v125_v24 = vsel %vm102_vm0, %v112_v18, 0.0  ;;  %v221_v25 = vsub.f32 1.0, %v350_v17  ;;  %v236_v26 = vmul.f32 %v328_v7, %v233_v8 }
  0x5f   :  { %v354_v27 = vpop.eup %353  ;;  %v120_v28 = vadd.f32 %v119_v19, %v111_v13  ;;  %v126_v29 = vrot.slane %v125_v24, 4  ;;  %v222_v30 = vsub.f32 1.0, %v352_v22  ;;  %v237_v31 = vmul.f32 %v329_v15, %v234_v16  ;;  %v132_v19 = vld [vmem:[#allocation7] sm:$0x7] }
  0x60   :  { %v356_v32 = vpop.eup %355  ;;  %v115_v33 = vrot.slane %v114_v23, 2  ;;  %v223_v34 = vsub.f32 1.0, %v354_v27  ;;  %v224_v35 = vsel %vm63_vm1, %v221_v25, 1.0  ;;  %v238_v36 = vmul.f32 %v330_v20, %v235_v21 }
  0x61   :  { %v358_v37 = vpop.eup %357  ;;  %v121_v38 = vrot.slane %v120_v28, 2  ;;  %v127_v39 = vadd.f32 %v126_v29, %v125_v24  ;;  %v213_v41 = vmul.f32 0.6931472, %v356_v32  ;;  %v225_v42 = vsel %vm64_vm2, %v222_v30, 1.0 }
  0x62   :  { %v360_v43 = vpop.eup %359  ;;  %v116_v44 = vadd.f32 %v115_v33, %v114_v23  ;;  %v215_v45 = vmul.f32 0.6931472, %v358_v37  ;;  %v226_v46 = vsel %vm65_vm3, %v223_v34, 1.0  ;;  %v227_v47 = vmul.f32 %v224_v35, %v224_v35 }
  0x63   :  { %v122_v48 = vadd.f32 %v121_v38, %v120_v28  ;;  %v128_v49 = vrot.slane %v127_v39, 2  ;;  %v217_v50 = vmul.f32 0.6931472, %v360_v43  ;;  %v218_v51 = vsub.f32 0.0, %v213_v41 }
  0x64   :  { %v117_v52 = vrot.slane %v116_v44, 1  ;;  %v219_v53 = vsub.f32 0.0, %v215_v45  ;;  %v228_v54 = vmul.f32 %v225_v42, %v225_v42  ;;  %v229_v55 = vmul.f32 %v226_v46, %v226_v46 }
  0x65   :  { %v123_v56 = vrot.slane %v122_v48, 1  ;;  %v129_v57 = vadd.f32 %v128_v49, %v127_v39  ;;  %v220_v58 = vsub.f32 0.0, %v217_v50  ;;  %v239_v59 = vsel %vm63_vm1, %v218_v51, %v236_v26 }
  0x66   :  { %v118_v60 = vadd.f32 %v117_v52, %v116_v44  ;;  %v240_v62 = vsel %vm64_vm2, %v219_v53, %v237_v31  ;;  %v242_v63 = vmul.f32 %v239_v59, %v227_v47  ;;  %v166_v25 = vmul.f32 %v164_v10, %v132_v19 }
  0x67   :  { %v124_v1 = vadd.f32 %v123_v56, %v122_v48  ;;  %v130_v2 = vrot.slane %v129_v57, 1  ;;  %v241_v4 = vsel %vm65_vm3, %v220_v58, %v238_v36  ;;  %v243_v5 = vmul.f32 %v240_v62, %v228_v54 }
  0x68   :  { %v167_v7 = vmul.f32 0.0001, %v118_v60  ;;  %v244_v8 = vmul.f32 %v241_v4, %v229_v55  ;;  %v245_v9 = vrot.slane %v242_v63, 4 }
  0x69   :  { %v131_v13 = vadd.f32 %v130_v2, %v129_v57  ;;  %v168_v14 = vmul.f32 0.0001, %v124_v1  ;;  %v251_v15 = vrot.slane %v243_v5, 4 }
  0x6a   :  { %v246_v16 = vadd.f32 %v245_v9, %v242_v63  ;;  %v257_v3 = vsel %vm102_vm0, %v244_v8, 0.0 }
  0x6b   :  { %v169_v11 = vmul.f32 0.0001, %v131_v13  ;;  %v173_v6 = vcombine.low %v167_v7, %v168_v14  ;;  %v252_v17 = vadd.f32 %v251_v15, %v243_v5  ;;  %v258_v18 = vrot.slane %v257_v3, 4 }
  0x6c   :  { %v247_v20 = vrot.slane %v246_v16, 2 }
  0x6d   :  { %v180_v12 = vrot.slane %v173_v6, %v568_v0  ;;  %v187_v21 = vrot.slane %v169_v11, %v568_v0  ;;  %v253_v22 = vrot.slane %v252_v17, 2  ;;  %v259_v23 = vadd.f32 %v258_v18, %v257_v3 }
  0x6e   :  { %v248_v24 = vadd.f32 %v247_v20, %v246_v16 }
  0x6f   :  { %v188_v26 = vcombine.low %v180_v12, %v187_v21  ;;  %v254_v27 = vadd.f32 %v253_v22, %v252_v17  ;;  %v260_v28 = vrot.slane %v259_v23, 2 }
  0x70   :  { %v249_v29 = vrot.slane %v248_v24, 1 }
  0x71   :  { %v195_v30 = vrot.slane %v188_v26, %v568_v0  ;;  %v255_v31 = vrot.slane %v254_v27, 1  ;;  %v261_v32 = vadd.f32 %v260_v28, %v259_v23 }
  0x72   :  { %v250_v34 = vadd.f32 %v249_v29, %v248_v24 }
  0x73   :  { %v197_v35 = vadd.f32 %v195_v30, %v166_v25  ;;  %v256_v36 = vadd.f32 %v255_v31, %v254_v27  ;;  %v262_v37 = vrot.slane %v261_v32, 1 }
  0x74   :  { %v264_v38 = vsub.f32 0.0, %v250_v34 }
  0x75   :  { %202 = vst.msk [vmem:[#allocation9] sm:$0x7] %vm597_vm4, %v197_v35  ;;  %v263_v39 = vadd.f32 %v262_v37, %v261_v32  ;;  %v265_v41 = vsub.f32 0.0, %v256_v36 }
  0x76   :  { %438 = shalt.err (!%p435_p0)
}
  0x77   :  { %s439_s29 = scalar_lea.hbm %s636_s4, 48 }
  0x78   :  { %p440_p1 = scmp.ne.s32.totalorder %s636_s4, %s439_s29  ;;  %p443_p2 = scmp.lt.u32.totalorder %s439_s29, %s636_s4 }
  0x7a   :  { %p445_p3 = pnand %p443_p2, %p440_p1 }
  0x7c   :  { %448 = shalt.err (!%p445_p3)
}
  0x7d   :  { %314 = dma.vmem_to_hbm [thread:$0]  %s312_s24, 48, %s636_s4, [#allocation10]   ;;  %v266_v40 = vsub.f32 0.0, %v263_v39  ;;  %v270_v42 = vcombine.low %v264_v38, %v265_v41 }
  0x7e   :  { %s484_s10 = smov [#allocation8]  }
  0x7f   :  { %v277_v43 = vrot.slane %v270_v42, %v568_v0  ;;  %v284_v44 = vrot.slane %v266_v40, %v568_v0  ;;  %s301_s1 = sshll.u32 %s484_s10, 4  ;;  %s302_s1 = int_to_ptr.vmem [resolvable:$true] %s301_s1 }
  0x80   :  { %s449_s11 = scalar_lea.vmem %s302_s1, 48  ;;  %s453_s12 = scalar_lea.vmem %s302_s1, 64 }
  0x81   :  { %v285_v45 = vcombine.low %v277_v43, %v284_v44  ;;  %p450_p4 = scmp.ne.s32.totalorder %s302_s1, %s449_s11  ;;  %p454_p5 = scmp.lt.s32.totalorder %s302_s1, %s302_s1 }
  0x82   :  { %p455_p6 = scmp.lt.s32.totalorder %s453_s12, %s449_s11 }
  0x83   :  { %v292_v46 = vrot.slane %v285_v45, %v568_v0 }
  0x84   :  { %p456_p7 = por %p455_p6, %p454_p5 }
  0x85   :  { %294 = vst.msk [vmem:[#allocation8] sm:$0x7] %vm597_vm4, %v292_v46 }
  0x86   :  { %p457_p8 = pnand %p456_p7, %p450_p4 }
  0x88   :  { %460 = shalt.err (!%p457_p8)
}
  0x89   :  { %s461_s14 = scalar_lea.hbm %s635_s3, 48 }
  0x8a   :  { %p462_p9 = scmp.ne.s32.totalorder %s635_s3, %s461_s14  ;;  %p465_p10 = scmp.lt.u32.totalorder %s461_s14, %s635_s3 }
  0x8c   :  { %p467_p11 = pnand %p465_p10, %p462_p9 }
  0x8e   :  { %470 = shalt.err (!%p467_p11)
}
  0x8f   :  { %304 = dma.vmem_to_hbm [thread:$0]  %s302_s1, 48, %s635_s3, [#allocation4]  }
  0x90   :  { %475 = dma.done.wait [#allocation4], 48  }
  0x91   :  { %476 = vsyncadd [#allocation4], 4294967248 }
  0x92   :  { %477 = dma.done.wait [#allocation10], 48  }
  0x93   :  { %478 = vsyncadd [#allocation10], 4294967248 }
  0x94   :  { %321 = vsyncpa [#allocation3], 1 }
  0x95   :  { %322 = vsyncpa [#allocation6], 1 }
  0x96   :  { %323 = vsyncpa [#allocation4], 1 }
  0x97   :  { %324 = vsyncpa [#allocation10], 1 }

</bundles_post_ra>
